<compile_context>
chip_gen: v7x
topology: tpu7x:2x2x1
jax: 0.10.0
libtpu: 0.0.40
codegen_flags: <defaults>
</compile_context>

<pallas_src>
import jax
import jax.numpy as jnp
from jax.experimental import pallas as pl
from jax.experimental.pallas import tpu as pltpu


# ~8 MiB blocks: per-step DMA time dwarfs the ~0.35 us per-step overhead on
# all generations, and 4 buffers x 8 MiB = 32 MiB of double-buffering fits
# v7x's 64 MiB physical VMEM with headroom.
_TARGET_BLOCK_BYTES = 8 * 1024 * 1024
# Raise the scoped-VMEM limit above the 16/32 MiB defaults (v5e/v6e/v7x) so
# the 32 MiB of buffers compile; still < v7x's 64 MiB physical VMEM.
_VMEM_LIMIT_BYTES = 40 * 1024 * 1024


# ---------------------------------------------------------------------------
# Path A (default): zero-data-movement aliased identity.
# ---------------------------------------------------------------------------

def _alias_identity_kernel(x_hbm_ref, o_hbm_ref):
    # Empty nn.ModuleList applied sequentially == identity.
    # Both refs are raw HBM (pl.ANY) so there is no automatic block DMA, and
    # the output buffer is aliased to the input (input_output_aliases={0:0}),
    # so the correct data is already in place: nothing to do.
    del x_hbm_ref, o_hbm_ref


def _identity_alias(x: jax.Array) -> jax.Array:
    return pl.pallas_call(
        _alias_identity_kernel,
        out_shape=jax.ShapeDtypeStruct(x.shape, x.dtype),
        in_specs=[pl.BlockSpec(memory_space=pl.ANY)],
        out_specs=pl.BlockSpec(memory_space=pl.ANY),
        # Essential for correctness of the no-op body: output buffer == input
        # buffer.  Pays off fully when the caller donates x (jit +
        # donate_argnums); otherwise XLA inserts one defensive copy.
        input_output_aliases={0: 0},
    )(x)


# ---------------------------------------------------------------------------
# Path B (force_copy=True): tuned streaming copy for non-donatable callers.
# ---------------------------------------------------------------------------

def _copy_kernel(x_ref, o_ref):
    o_ref[...] = x_ref[...]


def _pick_lanes(total: int) -> int:
    # Widest lane-dense last dim (multiple of 128) that divides the element
    # count.
    for lanes in (512, 256, 128):
        if total % lanes == 0:
            return lanes
    # TODO(synk): lane-sparse fallback for totals not divisible by 128 —
    # correct and VMEM-bounded (padded-lane footprint is accounted for below)
    # but bandwidth-inefficient; essentially never hit by real NN tensors.
    return 1


def _pick_block_rows(rows: int, lanes: int, itemsize: int) -> int:
    # Sublane packing: 8 rows for 4-byte, 16 for 2-byte, 32 for 1-byte dtypes.
    sub = max(8, 32 // itemsize)
    # VMEM pads the lane dim to 128, so budget with the padded width.
    padded_lane_bytes = max(lanes, 128) * itemsize
    target = _TARGET_BLOCK_BYTES // padded_lane_bytes
    target = max(sub, (target // sub) * sub)
    if target >= rows:
        # Whole array is <= ~one target block: a single full-extent block is
        # both legal and VMEM-bounded.
        return rows
    # cdiv grid below masks the ragged last block, so no divisibility needed.
    return target


def _identity_copy(x: jax.Array) -> jax.Array:
    orig_shape = x.shape
    total = x.size

    lanes = _pick_lanes(total)
    rows = total // lanes
    block_rows = _pick_block_rows(rows, lanes, x.dtype.itemsize)
    grid = (pl.cdiv(rows, block_rows),)

    flat = x.reshape(rows, lanes)

    out = pl.pallas_call(
        _copy_kernel,
        out_shape=jax.ShapeDtypeStruct((rows, lanes), x.dtype),
        grid=grid,
        in_specs=[pl.BlockSpec((block_rows, lanes), lambda i: (i, 0))],
        out_specs=pl.BlockSpec((block_rows, lanes), lambda i: (i, 0)),
        compiler_params=pltpu.CompilerParams(
            # Independent row blocks: lets v7x's two TensorCores each stream
            # their half when the grid has >= 2 steps (large inputs).
            dimension_semantics=("parallel",),
            vmem_limit_bytes=_VMEM_LIMIT_BYTES,
        ),
    )(flat)

    return out.reshape(orig_shape)


# ---------------------------------------------------------------------------
# Public wrapper.
# ---------------------------------------------------------------------------

def network_forward(x: jax.Array, *, force_copy: bool = False) -> jax.Array:
    """Forward pass of the (base) Network: identity over an empty layer list.

    force_copy=False (default): zero-data-movement aliased identity.
    force_copy=True: materialise a fresh output buffer with a streaming
                     Pallas copy (for callers that cannot alias/donate x).
    """
    # TODO(synk): Network.forward raises NotImplementedError in the reference;
    # only the empty-ModuleList (identity) semantics are representable here.
    if force_copy:
        return _identity_copy(x)
    return _identity_alias(x)


if __name__ == "__main__":
    key = jax.random.PRNGKey(0)
    # Small NCHW input consistent with an image-network forward signature.
    x = jax.random.normal(key, (2, 4, 16, 16), dtype=jnp.float32)

    # Default path: zero-data-movement aliased identity.
    y = jax.block_until_ready(network_forward(x))
    assert y.shape == x.shape and y.dtype == x.dtype
    assert bool(jnp.array_equal(y, x))

    # Copy path: tuned streaming copy for non-donatable callers.
    y2 = jax.block_until_ready(network_forward(x, force_copy=True))
    assert y2.shape == x.shape and y2.dtype == x.dtype
    assert bool(jnp.array_equal(y2, x))

    print("KERNEL_OK")
</pallas_src>

<mosaic_0001>
module attributes {stable_mosaic.version = 11 : i64} {
  func.func @_alias_identity_kernel(%arg0: memref<2x4x16x16xf32, #tpu.memory_space<any>>, %arg1: memref<2x4x16x16xf32, #tpu.memory_space<any>>) attributes {dimension_semantics = [], scalar_prefetch = 0 : i64, scratch_operands = 0 : i64, tpu.core_type = #tpu.core_type<tc>} {
    return
  }
}

</mosaic_0001>

<bundles_post_ra>
// kernel: tpu_custom_call.1
= control target key start
LH: loop header
LB: loop body
LE: loop exit
PB: predicated region body
PF: predicated region fallthrough
CT: control target
= control target key end

     0   :  { %s16_s0 = inlined_call_operand.hbm [shape: f32[2,4,16,16], index: 0, kind: input, shape index: {}, may-alias: {0,1}]   ;;  %s17_s1 = inlined_call_operand.hbm [shape: f32[2,4,16,16], index: 1, kind: output, shape index: {}, may-alias: {0,1}]  }

</bundles_post_ra>
